<compile_context>
chip_gen: v7x
topology: tpu7x:2x2x1
jax: 0.10.0
libtpu: 0.0.40
codegen_flags: <defaults>
</compile_context>

<pallas_src>
import functools

import jax
import jax.numpy as jnp
from jax.experimental import pallas as pl
from jax.experimental.pallas import tpu as pltpu


def _ceil_to(x: int, m: int) -> int:
    return ((x + m - 1) // m) * m


def _pick_block_b(B: int) -> int:
    """Batch tile: sublane-aligned, >=2 grid steps when possible (v7x dual-TC),
    capped at 1024 rows (multiple of 256 so the in-kernel sub-chunk divides)."""
    if B <= 8:
        return _ceil_to(B, 8)
    half = -(-B // 2)            # ceil(B / 2) -> at least 2 grid steps
    if half <= 256:
        return _ceil_to(half, 8)
    return min(1024, _ceil_to(half, 256))


def decoder_x_kernel(u_ref, w1_ref, b1_ref, w2_ref, b2_ref, w3_ref, b3_ref,
                     o_ref, *, chunk: int):
    # Hoist weight/bias loads out of the sub-chunk loop (fetched once per step).
    w1 = w1_ref[...]
    b1 = b1_ref[...]
    w2 = w2_ref[...]
    b2 = b2_ref[...]
    w3 = w3_ref[...]
    b3 = b3_ref[...]

    n_chunks = u_ref.shape[0] // chunk   # static; <= 4
    for c in range(n_chunks):            # statically unrolled, static slices
        rows = pl.ds(c * chunk, chunk)
        # layer 1: cast u -> bf16 in-kernel (cheap VPU op hidden under DMA),
        # MXU matmul with f32 accumulation, bias+ReLU in f32.
        u = u_ref[rows, :].astype(jnp.bfloat16)
        h = jnp.dot(u, w1, preferred_element_type=jnp.float32)
        h = jnp.maximum(h + b1, 0.0)
        # layer 2
        h = jnp.dot(h.astype(jnp.bfloat16), w2,
                    preferred_element_type=jnp.float32)
        h = jnp.maximum(h + b2, 0.0)
        # output layer (no activation); unpadded lane-dim store
        out = jnp.dot(h.astype(jnp.bfloat16), w3,
                      preferred_element_type=jnp.float32)
        o_ref[rows, :] = (out + b3).astype(o_ref.dtype)


def decoder_x_forward(u, params, *, block_b=None):
    """Fused MLP forward. u: [B, d_u] float32. params: dict of f32 weights/biases.
    Returns float32 [B, d_x] (matching the f32 PyTorch module)."""
    B, d_u = u.shape
    w1, b1, w2, b2, w3, b3 = (params[k] for k in ("w1", "b1", "w2", "b2", "w3", "b3"))
    h1 = w1.shape[1]
    h2 = w2.shape[1]
    d_x = w3.shape[1]

    # --- batch tile selection ---
    if block_b is None:
        bm = _pick_block_b(B)
    else:
        # validate/round user-supplied tile: multiple of 8 (f32 sublane);
        # multiples of 256 above 256 so the in-kernel sub-chunk divides evenly.
        bm = max(8, _ceil_to(int(block_b), 8))
        if bm > 256:
            bm = _ceil_to(bm, 256)
    B_pad = _ceil_to(B, bm)
    grid = (B_pad // bm,)
    chunk = bm if bm <= 256 else 256      # in-kernel sub-chunk (vreg pressure cap)

    # --- wrapper-side plumbing: only pad rows when needed; weights -> bf16 once ---
    u_p = u if B_pad == B else jnp.pad(u, ((0, B_pad - B), (0, 0)))
    bf16 = jnp.bfloat16
    w1_c = w1.astype(bf16)                # [d_u, h1]
    w2_c = w2.astype(bf16)                # [h1, h2]
    w3_c = w3.astype(bf16)                # [h2, d_x]  (NO lane padding)

    # Batch is the only tiled axis; weights/biases use constant index_maps
    # (fetched once).  Their double-buffers cost ~100 KB of VMEM — negligible —
    # so we skip a Buffered(1) pin to keep the lowering maximally portable.
    in_specs = [
        pl.BlockSpec((bm, d_u), lambda i: (i, 0)),
        pl.BlockSpec((d_u, h1), lambda i: (0, 0)),
        pl.BlockSpec((1, h1), lambda i: (0, 0)),
        pl.BlockSpec((h1, h2), lambda i: (0, 0)),
        pl.BlockSpec((1, h2), lambda i: (0, 0)),
        pl.BlockSpec((h2, d_x), lambda i: (0, 0)),
        pl.BlockSpec((1, d_x), lambda i: (0, 0)),
    ]
    # Unpadded output: last block dim equals the full array dim (legal), so the
    # f32 writeback is d_x wide instead of 128 — ~8x less HBM write traffic.
    out_specs = pl.BlockSpec((bm, d_x), lambda i: (i, 0))

    out_padded = pl.pallas_call(
        functools.partial(decoder_x_kernel, chunk=chunk),
        out_shape=jax.ShapeDtypeStruct((B_pad, d_x), jnp.float32),
        grid_spec=pltpu.PrefetchScalarGridSpec(
            num_scalar_prefetch=0,
            grid=grid,
            in_specs=in_specs,
            out_specs=out_specs,
        ),
        compiler_params=pltpu.CompilerParams(
            dimension_semantics=("parallel",),
        ),
    )(u_p, w1_c, b1, w2_c, b2, w3_c, b3)

    # strip batch padding only (no lane padding anymore); keep f32 output
    return out_padded[:B] if B_pad > B else out_padded


def init_decoder_x_params(key, d_u, d_x, hidden_dims=(128, 128)):
    """Deterministic synthetic init (Glorot-ish scaling), matching module shapes."""
    dims = [d_u, *hidden_dims, d_x]
    params = {}
    keys = jax.random.split(key, len(dims) - 1)
    for li, (fan_in, fan_out) in enumerate(zip(dims[:-1], dims[1:]), start=1):
        scale = 1.0 / jnp.sqrt(jnp.float32(fan_in))
        params[f"w{li}"] = (
            jax.random.normal(keys[li - 1], (fan_in, fan_out), jnp.float32) * scale
        )
        # biases kept 2D (1, out) so they live as lane-aligned VMEM tiles
        params[f"b{li}"] = jnp.zeros((1, fan_out), jnp.float32)
    return params


def decoder_x_reference(u, params):
    """Pure-JAX reference matching the kernel's precision policy
    (bf16 matmul operands, f32 accumulation, f32 bias/ReLU)."""
    bf16 = jnp.bfloat16
    h = jnp.dot(u.astype(bf16), params["w1"].astype(bf16),
                preferred_element_type=jnp.float32) + params["b1"]
    h = jnp.maximum(h, 0.0)
    h = jnp.dot(h.astype(bf16), params["w2"].astype(bf16),
                preferred_element_type=jnp.float32) + params["b2"]
    h = jnp.maximum(h, 0.0)
    return jnp.dot(h.astype(bf16), params["w3"].astype(bf16),
                   preferred_element_type=jnp.float32) + params["b3"]


def decoder_x_reference_f32(u, params):
    """Full-f32 reference of the PyTorch forward (semantic sanity check)."""
    h = jnp.maximum(u @ params["w1"] + params["b1"], 0.0)
    h = jnp.maximum(h @ params["w2"] + params["b2"], 0.0)
    return h @ params["w3"] + params["b3"]


if __name__ == "__main__":
    key = jax.random.PRNGKey(0)
    k_u, k_p = jax.random.split(key)

    # Small shapes consistent with DecoderX: batch=8, d_u=32, hidden=(128,128), d_x=16
    B, d_u, d_x = 8, 32, 16
    u = jax.random.normal(k_u, (B, d_u), jnp.float32)
    params = init_decoder_x_params(k_p, d_u, d_x, hidden_dims=(128, 128))

    out = decoder_x_forward(u, params)
    out = jax.block_until_ready(out)
    assert out.shape == (B, d_x)
    assert out.dtype == jnp.float32

    # tight check against the precision-matched reference
    ref = decoder_x_reference(u, params)
    assert jnp.allclose(out, ref, atol=2e-3, rtol=2e-3), "mismatch vs bf16/f32-acc reference"

    # loose semantic check against the full-f32 PyTorch-equivalent forward
    ref_f32 = decoder_x_reference_f32(u, params)
    assert jnp.allclose(out, ref_f32, atol=1e-1, rtol=1e-1), "mismatch vs f32 reference"

    # exercise the multi-step / sub-chunked path as well (B > 256)
    B2 = 600
    u2 = jax.random.normal(k_u, (B2, d_u), jnp.float32)
    out2 = jax.block_until_ready(decoder_x_forward(u2, params))
    assert out2.shape == (B2, d_x)
    ref2 = decoder_x_reference(u2, params)
    assert jnp.allclose(out2, ref2, atol=2e-3, rtol=2e-3), "mismatch on large-batch path"

    print("KERNEL_OK")
</pallas_src>

<mosaic_0001>
module attributes {stable_mosaic.version = 11 : i64} {
  func.func @decoder_x_kernel(%arg0: i32, %arg1: memref<8x32xf32, #tpu.memory_space<vmem>>, %arg2: memref<32x128xbf16, #tpu.memory_space<vmem>>, %arg3: memref<1x128xf32, #tpu.memory_space<vmem>>, %arg4: memref<128x128xbf16, #tpu.memory_space<vmem>>, %arg5: memref<1x128xf32, #tpu.memory_space<vmem>>, %arg6: memref<128x16xbf16, #tpu.memory_space<vmem>>, %arg7: memref<1x16xf32, #tpu.memory_space<vmem>>, %arg8: memref<8x16xf32, #tpu.memory_space<vmem>>) attributes {dimension_semantics = [#tpu.dimension_semantics<parallel>], iteration_bounds = array<i64: 1>, scalar_prefetch = 0 : i64, scratch_operands = 0 : i64, tpu.core_type = #tpu.core_type<tc>, window_params = [{transform_indices = @transform_0, window_bounds = array<i64: 8, 32>}, {pipeline_mode = #tpu.pipeline_mode<synchronous>, transform_indices = @transform_1, window_bounds = array<i64: 32, 128>}, {pipeline_mode = #tpu.pipeline_mode<synchronous>, transform_indices = @transform_2, window_bounds = array<i64: 1, 128>}, {pipeline_mode = #tpu.pipeline_mode<synchronous>, transform_indices = @transform_3, window_bounds = array<i64: 128, 128>}, {pipeline_mode = #tpu.pipeline_mode<synchronous>, transform_indices = @transform_4, window_bounds = array<i64: 1, 128>}, {pipeline_mode = #tpu.pipeline_mode<synchronous>, transform_indices = @transform_5, window_bounds = array<i64: 128, 16>}, {pipeline_mode = #tpu.pipeline_mode<synchronous>, transform_indices = @transform_6, window_bounds = array<i64: 1, 16>}, {transform_indices = @transform_7, window_bounds = array<i64: 8, 16>}]} {
    %c0 = arith.constant 0 : index
    %c0_0 = arith.constant 0 : index
    %0 = vector.load %arg2[%c0, %c0_0] : memref<32x128xbf16, #tpu.memory_space<vmem>>, vector<32x128xbf16>
    %c0_1 = arith.constant 0 : index
    %c0_2 = arith.constant 0 : index
    %1 = vector.load %arg3[%c0_1, %c0_2] : memref<1x128xf32, #tpu.memory_space<vmem>>, vector<1x128xf32>
    %c0_3 = arith.constant 0 : index
    %c0_4 = arith.constant 0 : index
    %2 = vector.load %arg4[%c0_3, %c0_4] : memref<128x128xbf16, #tpu.memory_space<vmem>>, vector<128x128xbf16>
    %c0_5 = arith.constant 0 : index
    %c0_6 = arith.constant 0 : index
    %3 = vector.load %arg5[%c0_5, %c0_6] : memref<1x128xf32, #tpu.memory_space<vmem>>, vector<1x128xf32>
    %c0_7 = arith.constant 0 : index
    %c0_8 = arith.constant 0 : index
    %4 = vector.load %arg6[%c0_7, %c0_8] : memref<128x16xbf16, #tpu.memory_space<vmem>>, vector<128x16xbf16>
    %c0_9 = arith.constant 0 : index
    %c0_10 = arith.constant 0 : index
    %5 = vector.load %arg7[%c0_9, %c0_10] : memref<1x16xf32, #tpu.memory_space<vmem>>, vector<1x16xf32>
    %c0_11 = arith.constant 0 : index
    %c0_12 = arith.constant 0 : index
    %6 = vector.load %arg1[%c0_11, %c0_12] : memref<8x32xf32, #tpu.memory_space<vmem>>, vector<8x32xf32>
    %7 = arith.truncf %6 : vector<8x32xf32> to vector<8x32xbf16>
    %cst = arith.constant dense<0.000000e+00> : vector<8x128xf32>
    %8 = tpu.matmul %7, %0, %cst {dimension_numbers = #tpu.dot_dimension_numbers<[1], [0], [0], [1], [0, 0, 1, 1], [], []>} : vector<8x32xbf16>, vector<32x128xbf16>, vector<8x128xf32> -> vector<8x128xf32>
    %9 = vector.broadcast %1 : vector<1x128xf32> to vector<8x128xf32>
    %10 = arith.addf %8, %9 : vector<8x128xf32>
    %cst_13 = arith.constant 0.000000e+00 : f32
    %11 = vector.broadcast %cst_13 : f32 to vector<8x128xf32>
    %12 = arith.maximumf %10, %11 : vector<8x128xf32>
    %13 = arith.truncf %12 : vector<8x128xf32> to vector<8x128xbf16>
    %cst_14 = arith.constant dense<0.000000e+00> : vector<8x128xf32>
    %14 = tpu.matmul %13, %2, %cst_14 {dimension_numbers = #tpu.dot_dimension_numbers<[1], [0], [0], [1], [0, 0, 1, 1], [], []>} : vector<8x128xbf16>, vector<128x128xbf16>, vector<8x128xf32> -> vector<8x128xf32>
    %15 = vector.broadcast %3 : vector<1x128xf32> to vector<8x128xf32>
    %16 = arith.addf %14, %15 : vector<8x128xf32>
    %cst_15 = arith.constant 0.000000e+00 : f32
    %17 = vector.broadcast %cst_15 : f32 to vector<8x128xf32>
    %18 = arith.maximumf %16, %17 : vector<8x128xf32>
    %19 = arith.truncf %18 : vector<8x128xf32> to vector<8x128xbf16>
    %cst_16 = arith.constant dense<0.000000e+00> : vector<8x16xf32>
    %20 = tpu.matmul %19, %4, %cst_16 {dimension_numbers = #tpu.dot_dimension_numbers<[1], [0], [0], [1], [0, 0, 1, 1], [], []>} : vector<8x128xbf16>, vector<128x16xbf16>, vector<8x16xf32> -> vector<8x16xf32>
    %21 = vector.broadcast %5 : vector<1x16xf32> to vector<8x16xf32>
    %22 = arith.addf %20, %21 : vector<8x16xf32>
    %c0_17 = arith.constant 0 : index
    %c0_18 = arith.constant 0 : index
    %23 = vector.load %arg8[%c0_17, %c0_18] : memref<8x16xf32, #tpu.memory_space<vmem>>, vector<8x16xf32>
    tpu.vector_store %arg8[%c0_17, %c0_18], %22 {strides = array<i32>} : memref<8x16xf32, #tpu.memory_space<vmem>>, vector<8x16xf32>,
    return
  }
  func.func @transform_0(%arg0: i32) -> (i32, i32) {
    %c0_i32 = arith.constant 0 : i32
    %c0_i32_0 = arith.constant 0 : i32
    return %arg0, %c0_i32 : i32, i32
  }
  func.func @transform_1(%arg0: i32) -> (i32, i32) {
    %c0_i32 = arith.constant 0 : i32
    %c0_i32_0 = arith.constant 0 : i32
    %c0_i32_1 = arith.constant 0 : i32
    return %c0_i32, %c0_i32_0 : i32, i32
  }
  func.func @transform_2(%arg0: i32) -> (i32, i32) {
    %c0_i32 = arith.constant 0 : i32
    %c0_i32_0 = arith.constant 0 : i32
    %c0_i32_1 = arith.constant 0 : i32
    return %c0_i32, %c0_i32_0 : i32, i32
  }
  func.func @transform_3(%arg0: i32) -> (i32, i32) {
    %c0_i32 = arith.constant 0 : i32
    %c0_i32_0 = arith.constant 0 : i32
    %c0_i32_1 = arith.constant 0 : i32
    return %c0_i32, %c0_i32_0 : i32, i32
  }
  func.func @transform_4(%arg0: i32) -> (i32, i32) {
    %c0_i32 = arith.constant 0 : i32
    %c0_i32_0 = arith.constant 0 : i32
    %c0_i32_1 = arith.constant 0 : i32
    return %c0_i32, %c0_i32_0 : i32, i32
  }
  func.func @transform_5(%arg0: i32) -> (i32, i32) {
    %c0_i32 = arith.constant 0 : i32
    %c0_i32_0 = arith.constant 0 : i32
    %c0_i32_1 = arith.constant 0 : i32
    return %c0_i32, %c0_i32_0 : i32, i32
  }
  func.func @transform_6(%arg0: i32) -> (i32, i32) {
    %c0_i32 = arith.constant 0 : i32
    %c0_i32_0 = arith.constant 0 : i32
    %c0_i32_1 = arith.constant 0 : i32
    return %c0_i32, %c0_i32_0 : i32, i32
  }
  func.func @transform_7(%arg0: i32) -> (i32, i32) {
    %c0_i32 = arith.constant 0 : i32
    %c0_i32_0 = arith.constant 0 : i32
    return %arg0, %c0_i32 : i32, i32
  }
}

</mosaic_0001>

<bundles_post_ra>
// kernel: tpu_custom_call.1
= control target key start
LH: loop header
LB: loop body
LE: loop exit
PB: predicated region body
PF: predicated region fallthrough
CT: control target
= control target key end

     0   :  { %12 = vsyncpa [#allocation3], 0  ;;  %s668_s0 = inlined_call_operand.hbm [shape: f32[8,32], index: 0, kind: input, shape index: {}]   ;;  %s669_s1 = inlined_call_operand.vmem [shape: bf16[32,128], index: 1, kind: input, shape index: {}]   ;;  %s670_s2 = inlined_call_operand.vmem [shape: f32[1,128], index: 2, kind: input, shape index: {}]   ;;  %s671_s3 = inlined_call_operand.vmem [shape: bf16[128,128], index: 3, kind: input, shape index: {}]   ;;  %s672_s4 = inlined_call_operand.vmem [shape: f32[1,128], index: 4, kind: input, shape index: {}]   ;;  %s673_s5 = inlined_call_operand.vmem [shape: bf16[128,16], index: 5, kind: input, shape index: {}]   ;;  %s674_s6 = inlined_call_operand.vmem [shape: f32[1,16], index: 6, kind: input, shape index: {}]   ;;  %s675_s7 = inlined_call_operand.hbm [shape: f32[8,16], index: 7, kind: output, shape index: {}]  }
   0x1   :  { %13 = vsyncpa [#allocation4], 0  ;;  %s513_s24 = smov [#allocation2]   ;;  %s465_s28 = scalar_lea.hbm %s668_s0, 128 }
   0x2   :  { %s20_s25 = sshll.u32 %s513_s24, 4  ;;  %p466_p0 = scmp.ne.s32.totalorder %s668_s0, %s465_s28  ;;  %s21_s25 = int_to_ptr.vmem [resolvable:$true] %s20_s25 }
   0x3   :  { %p469_p1 = scmp.lt.u32.totalorder %s465_s28, %s668_s0 }
   0x5   :  { %p471_p2 = pnand %p469_p1, %p466_p0 }
   0x7   :  { %474 = shalt.err (!%p471_p2)
}
   0x8   :  { %s475_s10 = scalar_lea.vmem %s21_s25, 128  ;;  %p480_p4 = scmp.lt.s32.totalorder %s21_s25, %s21_s25 }
   0x9   :  { %p476_p3 = scmp.ne.s32.totalorder %s21_s25, %s475_s10  ;;  %p481_p5 = scmp.lt.s32.totalorder %s475_s10, %s475_s10 }
   0xb   :  { %p482_p6 = por %p481_p5, %p480_p4 }
   0xd   :  { %p483_p7 = pnand %p482_p6, %p476_p3 }
   0xf   :  { %486 = shalt.err (!%p483_p7)
}
  0x10   :  { %23 = dma.hbm_to_vmem [thread:$0]  %s668_s0, 128, %s21_s25, [#allocation3]  }
  0x11   :  { %509 = dma.done.wait [#allocation3], 128  }
  0x12   :  { %510 = vsyncadd [#allocation3], 4294967168  ;;  %v514_v0 = vmov 0.0   ;;  %vm515_vm0 = vmmov 0   ;;  %v447_v1 = vld [vmem:[%s669_s1] sm:$0xff]   ;;  %v448_v2 = vld [vmem:[%s669_s1 + $0x8] sm:$0xff]  }
  0x13   :  { %395 = vmatprep.subr.bf16.mxu0 %v514_v0  ;;  %399 = vmatprep.mubr.msk.bf16.mxu0 %vm515_vm0, %v514_v0  ;;  %v79_v3 = vld [vmem:[#allocation2] sm:$0xff]  ;;  %v450_v6 = vld [vmem:[%s671_s3 + $0x8] sm:$0xff]   ;;  %vm99_vm1 = vcmask 261120   ;;  %v451_v7 = vld [vmem:[%s671_s3 + $0x10] sm:$0xff]   ;;  %s516_s26 = smov [#allocation5]   ;;  %vm335_vm2 = vcmask 130048  }
  0x14   :  { %403 = vmatprep.subr.bf16.mxu1 %v514_v0  ;;  %419 = vmatprep.mubr.msk.bf16.mxu1 %vm515_vm0, %v514_v0  ;;  %v449_v4 = vld [vmem:[%s671_s3] sm:$0xff]   ;;  %v80_v5 = vpack.c.bf16 %v79_v3, %v79_v3  ;;  %v452_v8 = vld [vmem:[%s671_s3 + $0x18] sm:$0xff]   ;;  %v454_v10 = vld [vmem:[%s671_s3 + $0x28] sm:$0xff]   ;;  %s343_s27 = sshll.u32 %s516_s26, 4  ;;  %s344_s27 = int_to_ptr.vmem [resolvable:$true] %s343_s27 }
  0x15   :  { %396 = vmatpush3.bf16.msra.mxu0 %v447_v1  ;;  %404 = vmatpush3.bf16.msra.mxu1 %v449_v4  ;;  %v453_v9 = vld [vmem:[%s671_s3 + $0x20] sm:$0xff]   ;;  %v455_v11 = vld [vmem:[%s671_s3 + $0x30] sm:$0xff]   ;;  %v456_v12 = vld [vmem:[%s671_s3 + $0x38] sm:$0xff]   ;;  %p492_p9 = scmp.lt.s32.totalorder %s344_s27, %s344_s27 }
  0x16   :  { %397 = vmatprep.subr.bf16.mxu0 %v514_v0  ;;  %405 = vmatprep.subr.bf16.mxu1 %v514_v0  ;;  %v457_v13 = vld [vmem:[%s673_s5] sm:$0xff]   ;;  %v458_v14 = vld [vmem:[%s673_s5 + $0x8] sm:$0xff]   ;;  %v459_v15 = vld [vmem:[%s673_s5 + $0x10] sm:$0xff]  }
  0x17   :  { %v460_v16 = vld [vmem:[%s673_s5 + $0x18] sm:$0xff]   ;;  %v461_v17 = vld [vmem:[%s673_s5 + $0x20] sm:$0xff]   ;;  %v462_v18 = vld [vmem:[%s673_s5 + $0x28] sm:$0xff]  }
  0x18   :  { %v352_v19 = vld [vmem:[%s670_s2] ss:$0 sm:$0xff]  ;;  %v463_v27 = vld [vmem:[%s673_s5 + $0x30] sm:$0xff]   ;;  %v464_v28 = vld [vmem:[%s673_s5 + $0x38] sm:$0xff]  }
  0x19   :  { %398 = vmatpush3.bf16.msra.mxu0 %v448_v2  ;;  %406 = vmatpush3.bf16.msra.mxu1 %v450_v6  ;;  %v356_v29 = vld [vmem:[%s672_s4] ss:$0 sm:$0xff]  ;;  %s487_s4 = scalar_lea.vmem %s344_s27, 128 }
  0x1a   :  { %423 = vmatprep.subr.bf16.mxu0 %v514_v0  ;;  %407 = vmatprep.subr.bf16.mxu1 %v514_v0  ;;  %v365_v37 = vld [vmem:[%s674_s6] ss:$0 sm:$0xff]  ;;  %p488_p8 = scmp.ne.s32.totalorder %s344_s27, %s487_s4  ;;  %p493_p10 = scmp.lt.s32.totalorder %s487_s4, %s487_s4 }
  0x1c   :  { %400 = vmatmul.mubr.msk.bf16.vlgmr.msra.gmra.mrb[0].mxu0 %vm99_vm1, %v80_v5  ;;  %p494_p11 = por %p493_p10, %p492_p9 }
  0x1d   :  { %439 = vmatprep.mubr.msk.bf16.mxu0 %vm515_vm0, %v514_v0  ;;  %408 = vmatpush3.bf16.msra.mxu1 %v451_v7 }
  0x1e   :  { %409 = vmatprep.subr.bf16.mxu1 %v514_v0  ;;  %424 = vmatpush3.bf16.msra.mxu0 %v457_v13  ;;  %p495_p12 = pnand %p494_p11, %p488_p8 }
  0x1f   :  { %425 = vmatprep.subr.bf16.mxu0 %v514_v0 }
  0x21   :  { %410 = vmatpush3.bf16.msra.mxu1 %v452_v8 }
  0x22   :  { %411 = vmatprep.subr.bf16.mxu1 %v514_v0  ;;  %426 = vmatpush3.bf16.msra.mxu0 %v458_v14 }
  0x23   :  { %427 = vmatprep.subr.bf16.mxu0 %v514_v0 }
  0x25   :  { %412 = vmatpush3.bf16.msra.mxu1 %v453_v9 }
  0x26   :  { %413 = vmatprep.subr.bf16.mxu1 %v514_v0  ;;  %428 = vmatpush3.bf16.msra.mxu0 %v459_v15 }
  0x27   :  { %429 = vmatprep.subr.bf16.mxu0 %v514_v0 }
  0x29   :  { %414 = vmatpush3.bf16.msra.mxu1 %v454_v10 }
  0x2a   :  { %415 = vmatprep.subr.bf16.mxu1 %v514_v0  ;;  %430 = vmatpush3.bf16.msra.mxu0 %v460_v16 }
  0x2b   :  { %431 = vmatprep.subr.bf16.mxu0 %v514_v0 }
  0x2d   :  { %416 = vmatpush3.bf16.msra.mxu1 %v455_v11 }
  0x2e   :  { %417 = vmatprep.subr.bf16.mxu1 %v514_v0  ;;  %432 = vmatpush3.bf16.msra.mxu0 %v461_v17 }
  0x2f   :  { %433 = vmatprep.subr.bf16.mxu0 %v514_v0 }
  0x31   :  { %418 = vmatpush3.bf16.msra.mxu1 %v456_v12 }
  0x32   :  { %434 = vmatpush3.bf16.msra.mxu0 %v462_v18 }
  0x33   :  { %435 = vmatprep.subr.bf16.mxu0 %v514_v0 }
  0x36   :  { %436 = vmatpush3.bf16.msra.mxu0 %v463_v27 }
  0x37   :  { %437 = vmatprep.subr.bf16.mxu0 %v514_v0 }
  0x3a   :  { %438 = vmatpush3.bf16.msra.mxu0 %v464_v28 }
  0xef   :  { %v137_v20 = vpop.f32.mrb[0].mxu0 }
  0xf0   :  { %v138_v21 = vadd.f32 %v352_v19, %v137_v20  ;;  %v401_v22 = vpop.f32.mrb[1].mxu0 }
  0xf1   :  { %v140_v23 = vpop.f32.mrb[2].mxu0 }
  0xf2   :  { %v143_v24 = vmax.f32 %v138_v21, 0.0  ;;  %v402_v25 = vpop.f32.mrb[3].mxu0 }
  0xf4   :  { %v144_v26 = vpack.c.bf16 %v143_v24, %v143_v24 }
  0xf6   :  { %420 = vmatmul.mubr.bf16.vlgmr.msra.gmra.mrb[0].mxu1 %v144_v26 }
 0x1c9   :  { %v233_v30 = vpop.f32.mrb[0].mxu1 }
 0x1ca   :  { %v234_v31 = vadd.f32 %v356_v29, %v233_v30  ;;  %v421_v32 = vpop.f32.mrb[1].mxu1 }
 0x1cb   :  { %v236_v33 = vpop.f32.mrb[2].mxu1 }
 0x1cc   :  { %v239_v34 = vmax.f32 %v234_v31, 0.0  ;;  %v422_v35 = vpop.f32.mrb[3].mxu1 }
 0x1ce   :  { %v240_v36 = vpack.c.bf16 %v239_v34, %v239_v34 }
 0x1d0   :  { %440 = vmatmul.mubr.bf16.vlgmr.msra.gmra.mrb[4].mxu0 %v240_v36 }
 0x2a3   :  { %v329_v38 = vpop.f32.mrb[4].mxu0 }
 0x2a4   :  { %v330_v39 = vadd.f32 %v365_v37, %v329_v38  ;;  %v441_v40 = vpop.f32.mrb[5].mxu0 }
 0x2a5   :  { %v332_v41 = vpop.f32.mrb[6].mxu0 }
 0x2a6   :  { %v442_v42 = vpop.f32.mrb[7].mxu0  ;;  %336 = vst.msk [vmem:[#allocation5] sm:$0xff] %vm335_vm2, %v330_v39 }
 0x2a7   :  { %498 = shalt.err (!%p495_p12)
}
 0x2a8   :  { %s499_s6 = scalar_lea.hbm %s675_s7, 128 }
 0x2a9   :  { %p500_p13 = scmp.ne.s32.totalorder %s675_s7, %s499_s6  ;;  %p503_p0 = scmp.lt.u32.totalorder %s499_s6, %s675_s7 }
 0x2ab   :  { %p505_p1 = pnand %p503_p0, %p500_p13 }
 0x2ad   :  { %508 = shalt.err (!%p505_p1)
}
 0x2ae   :  { %346 = dma.vmem_to_hbm [thread:$0]  %s344_s27, 128, %s675_s7, [#allocation4]  }
 0x2af   :  { %511 = dma.done.wait [#allocation4], 128  }
 0x2b0   :  { %512 = vsyncadd [#allocation4], 4294967168 }
 0x2b1   :  { %350 = vsyncpa [#allocation3], 1 }
 0x2b2   :  { %351 = vsyncpa [#allocation4], 1 }

</bundles_post_ra>
